<compile_context>
chip_gen: v6e
topology: v6e:2x2x1
jax: 0.10.0
libtpu: 0.0.40
codegen_flags: <defaults>
</compile_context>

<pallas_src>
from functools import partial

import jax
import jax.numpy as jnp
from jax.experimental import pallas as pl
from jax.experimental.pallas import tpu as pltpu


# ------------------------------ kernel ------------------------------------ #

def _dca_offsets_kernel(x_ref, out_ref, acc_ref, *, channel, n_offsets,
                        bf16_elementwise, mm_dtype):
    """One grid step.

    x_ref:   (Bt, C, T_HW) VMEM tile of the (B, C, HW_pad) input.
    out_ref: (Bt, n_offsets, C) int32 output block (resident across HW axis).
    acc_ref: (Bt, C, C) float32 energy accumulator (VMEM scratch).
    """
    C = channel
    hw = pl.program_id(1)

    @pl.when(hw == 0)
    def _():
        acc_ref[...] = jnp.zeros_like(acc_ref)

    x = x_ref[...]                                          # (Bt, C, T)

    if bf16_elementwise:
        # bf16 stays bf16 through the elementwise section (2x VALU lanes on
        # v6e/v7x, no tile-sized f32 copies); channel stats accumulate in f32.
        s1 = jnp.sum(x, axis=1, dtype=jnp.float32, keepdims=True)       # (Bt,1,T)
        s2 = jnp.sum(x * x, axis=1, dtype=jnp.float32, keepdims=True)   # (Bt,1,T)
        mean = s1 * (1.0 / C)
        var = (s2 - C * mean * mean) * (1.0 / (C - 1))      # unbiased (torch.std)
        std = jnp.sqrt(jnp.maximum(var, 0.0))               # clamp f32 cancellation
        shift = (mean / (std + 1e-5)).astype(x.dtype)       # (Bt,1,T)
        xn = x - shift                                      # PyTorch precedence quirk
    else:
        xf = x.astype(jnp.float32)                          # no-op for f32 input
        s1 = jnp.sum(xf, axis=1, keepdims=True)
        s2 = jnp.sum(xf * xf, axis=1, keepdims=True)
        mean = s1 * (1.0 / C)
        var = (s2 - C * mean * mean) * (1.0 / (C - 1))
        std = jnp.sqrt(jnp.maximum(var, 0.0))
        xn = xf - mean / (std + 1e-5)                       # x - (mean/(std+eps))

    xn_mm = xn.astype(mm_dtype)                             # no-op when already bf16
    # Partial unnormalized covariance for this HW tile:
    # (Bt, C, T) x (Bt, C, T) contracted on T (the lane dim of both) -> (Bt, C, C).
    acc_ref[...] += jax.lax.dot_general(
        xn_mm, xn_mm,
        dimension_numbers=(((2,), (2,)), ((0,), (0,))),
        preferred_element_type=jnp.float32)

    @pl.when(hw == pl.num_programs(1) - 1)
    def _():
        energy = acc_ref[...]                               # (Bt, C, C)
        bt = energy.shape[0]
        row_ids = jax.lax.broadcasted_iota(jnp.int32, (bt, C, C), 1)
        col_ids = jax.lax.broadcasted_iota(jnp.int32, (bt, C), 1)
        neg_big = jnp.float32(jnp.finfo(jnp.float32).min)   # finite mask sentinel

        # top-k along the row (first channel) axis via iterative argmax with
        # first-occurrence tie-break, descending — same order as jax.lax.top_k.
        # Each picked row is stored straight to out_ref (static slice) instead
        # of concatenating, keeping vreg live ranges short for large C.
        e = energy
        for i in range(n_offsets):                          # n_offsets is small/static
            max_val = jnp.max(e, axis=1, keepdims=True)     # (Bt, 1, C)
            cand = jnp.where(e == max_val, row_ids, C)
            idx = jnp.min(cand, axis=1)                     # (Bt, C) argmax, lowest idx
            out_ref[:, i:i + 1, :] = (idx - col_ids)[:, None, :]   # locations - delta
            if i + 1 < n_offsets:
                e = jnp.where(row_ids == idx[:, None, :], neg_big, e)


# --------------------------- tiling planner -------------------------------- #

def _round_up(x, m):
    return ((x + m - 1) // m) * m


def _device_kind():
    try:
        return jax.devices()[0].device_kind.lower()
    except Exception:
        return ""


def _is_v7(kind):
    return ("v7" in kind) or ("7x" in kind)


def _vmem_capacity_bytes(kind):
    cap = None
    try:
        cap = int(getattr(pltpu.get_tpu_info(), "vmem_capacity_bytes", 0)) or None
    except Exception:
        cap = None
    if cap is None:
        cap = (64 << 20) if _is_v7(kind) else (128 << 20)
    if _is_v7(kind):
        cap = min(cap, 64 << 20)        # 64 MiB per TensorCore on v7x
    return cap


def _largest_divisor_le(n, cap):
    cap = max(1, min(cap, n))
    for d in range(cap, 0, -1):
        if n % d == 0:
            return d
    return 1


def _plan_tiling(B, C, HW, itemsize, n_offsets, kind, bf16_elementwise,
                 max_hw_tile=None, max_bt=32):
    """Pick (bt, t_hw, hw_pad, vmem_limit_bytes) for the grid."""
    vmem_cap = _vmem_capacity_bytes(kind)
    budget = int(vmem_cap * 0.75)       # leave headroom for Mosaic internal scratch
    # Per-step input target: ~12 MiB on 128-MiB-VMEM chips, ~7 MiB on v7x, so the
    # ~0.35 us per-step overhead is amortized against multi-us DMAs.
    in_target = (12 << 20) if vmem_cap >= (96 << 20) else (7 << 20)

    hw128 = _round_up(HW, 128)
    # Prefer a large HW tile first (lane-dense, 128-aligned), then fill with bt.
    t_cap = max(128, (in_target // max(C * itemsize, 1)) // 128 * 128)
    if max_hw_tile is not None:
        t_cap = min(t_cap, max(128, (int(max_hw_tile) // 128) * 128))
    t_hw = min(hw128, t_cap)
    if hw128 % t_hw != 0:
        # Prefer an exact 128-aligned divisor nearby to avoid padding waste.
        lo = max(128, (t_hw // 2 // 128) * 128)
        for t in range(t_hw, lo - 1, -128):
            if hw128 % t == 0:
                t_hw = t
                break

    bt_cap = max(1, in_target // max(C * t_hw * itemsize, 1))
    bt_cap = min(bt_cap, max_bt)
    if _is_v7(kind) and B >= 2:
        bt_cap = min(bt_cap, B // 2)    # keep >=2 batch steps for the 2 TCs
    bt = _largest_divisor_le(B, bt_cap)

    inter_per_elem = 6 if bf16_elementwise else 12  # traced tile intermediates

    def live_bytes(bt_, t_):
        in_b = bt_ * C * t_ * itemsize              # one input buffer
        inter = bt_ * C * t_ * inter_per_elem       # x*x / xn / upcasts
        acc = bt_ * C * C * 4                       # energy accumulator
        epi = 5 * bt_ * C * C * 4                   # top-k temporaries (last step)
        out_b = 2 * bt_ * n_offsets * C * 4         # double-buffered output block
        return 2 * in_b + inter + acc + epi + out_b

    while live_bytes(bt, t_hw) > budget:
        if bt > 1:
            bt = _largest_divisor_le(B, bt - 1)
        elif t_hw > 128:
            t_hw = max(128, ((t_hw // 2) // 128) * 128)
        else:
            break

    hw_pad = _round_up(HW, t_hw)
    vmem_limit = min(int(vmem_cap * 0.9),
                     max(2 * live_bytes(bt, t_hw), 32 << 20))
    return bt, t_hw, hw_pad, int(vmem_limit)


# ------------------------------ wrapper ------------------------------------ #

def dca_offsets(x, n_offsets, *, max_hw_tile=None, allow_bf16_matmul=False):
    """x: (B, C, H, W) float array (NCHW). Returns (B, n_offsets, C) int32.

    Equivalent to dca_offsets_layer(channel=C, n_offsets=n_offsets)(x) (the
    module has no learned parameters), except indices are int32 (not int64) and
    the (B, n_offsets, C) shape is kept even when torch's .squeeze() would drop
    a singleton dim. Requires C >= 2 (torch.std over a single channel is NaN)
    and n_offsets <= C.

    allow_bf16_matmul: optionally run the energy matmul in bf16 (f32 accumulate)
    for f32 inputs — useful on v5e where the f32 MXU is slow — at the cost of
    possible index flips on near-ties.
    """
    B, C, H, W = x.shape
    if C < 2:
        raise ValueError("dca_offsets requires channel >= 2 (std over dim=1).")
    if n_offsets > C:
        raise ValueError("n_offsets must be <= channel.")
    HW = H * W

    kind = _device_kind()
    in_dtype = jnp.dtype(x.dtype)
    # bf16 inputs keep the elementwise section in bf16 on v6e/v7x (bf16 VPU);
    # v5e has no bf16 VALU, so upcast there. f32 inputs keep the exact f32 path.
    bf16_elementwise = (in_dtype == jnp.bfloat16) and ("v5" not in kind)
    if in_dtype == jnp.bfloat16 or allow_bf16_matmul:
        mm_dtype = jnp.bfloat16
    else:
        mm_dtype = jnp.float32

    bt, t_hw, hw_pad, vmem_limit = _plan_tiling(
        B, C, HW, in_dtype.itemsize, n_offsets, kind, bf16_elementwise,
        max_hw_tile=max_hw_tile)

    xf = x.reshape(B, C, HW)
    if hw_pad != HW:
        # Zero columns normalize to exactly 0 and contribute exactly 0 to the
        # energy, so lane-aligned padding is exact.
        xf = jnp.pad(xf, ((0, 0), (0, 0), (0, hw_pad - HW)))

    grid = (B // bt, hw_pad // t_hw)
    kernel = partial(_dca_offsets_kernel, channel=C, n_offsets=n_offsets,
                     bf16_elementwise=bf16_elementwise, mm_dtype=mm_dtype)
    # NOTE: pipeline_mode=pl.Buffered(3) on the input spec is a possible further
    # tweak to hide the last-step epilogue bubble; left at the default depth.
    return pl.pallas_call(
        kernel,
        out_shape=jax.ShapeDtypeStruct((B, n_offsets, C), jnp.int32),
        grid=grid,
        in_specs=[pl.BlockSpec((bt, C, t_hw), lambda b, h: (b, 0, h))],
        out_specs=pl.BlockSpec((bt, n_offsets, C), lambda b, h: (b, 0, 0)),
        scratch_shapes=[pltpu.VMEM((bt, C, C), jnp.float32)],
        compiler_params=pltpu.CompilerParams(
            dimension_semantics=("parallel", "arbitrary"),
            vmem_limit_bytes=vmem_limit),
    )(xf)


# ------------------------------ reference ---------------------------------- #

def dca_offsets_ref(x, n_offsets):
    """Pure-JAX reference mirroring the PyTorch code."""
    B, C, H, W = x.shape
    x = x.astype(jnp.float32)
    mean = x.mean(axis=1, keepdims=True)
    std = x.std(axis=1, keepdims=True, ddof=1)
    xn = x - mean / (std + 1e-5)                            # same precedence quirk
    xf = xn.reshape(B, C, -1)
    energy = jnp.einsum("bcn,bdn->bcd", xf, xf)             # (B, C, C)
    # torch.topk(..., dim=1): top-k over the first C axis for each column c
    et = jnp.transpose(energy, (0, 2, 1))                   # (B, C_col, C_row)
    _, idx = jax.lax.top_k(et, n_offsets)                   # (B, C_col, k)
    locations = jnp.transpose(idx, (0, 2, 1))               # (B, k, C_col)
    delta = jnp.arange(C, dtype=idx.dtype)[None, None, :]
    return (locations - delta).astype(jnp.int32)


if __name__ == "__main__":
    key = jax.random.PRNGKey(0)

    # Small NCHW problem consistent with the module.
    B, C, H, W = 2, 8, 16, 16
    n_offsets = 3
    x = jax.random.normal(key, (B, C, H, W), dtype=jnp.float32)

    out = jax.block_until_ready(dca_offsets(x, n_offsets))
    ref = dca_offsets_ref(x, n_offsets)
    assert out.shape == (B, n_offsets, C), out.shape
    assert out.dtype == jnp.int32, out.dtype
    assert bool(jnp.all(out == ref)), "mismatch vs pure-JAX reference"

    # Exercise the HW-tiled reduction path (hw grid axis > 1).
    out_tiled = jax.block_until_ready(dca_offsets(x, n_offsets, max_hw_tile=128))
    assert bool(jnp.all(out_tiled == ref)), "mismatch on HW-tiled path"

    # Exercise the lane-padding path (HW = 100, not a multiple of 128).
    x2 = jax.random.normal(jax.random.PRNGKey(1), (2, 8, 10, 10), jnp.float32)
    out_pad = jax.block_until_ready(dca_offsets(x2, n_offsets))
    assert bool(jnp.all(out_pad == dca_offsets_ref(x2, n_offsets))), \
        "mismatch on HW-padded path"

    # Smoke-test the bf16 streaming path (indices may legitimately differ from
    # the f32 reference on near-ties, so only shape/dtype are checked here).
    out_bf16 = jax.block_until_ready(dca_offsets(x.astype(jnp.bfloat16), n_offsets))
    assert out_bf16.shape == (B, n_offsets, C) and out_bf16.dtype == jnp.int32

    print("KERNEL_OK")
</pallas_src>

<mosaic_0001>
module attributes {stable_mosaic.version = 11 : i64} {
  func.func @_dca_offsets_kernel(%arg0: i32, %arg1: i32, %arg2: memref<2x8x256xf32, #tpu.memory_space<vmem>>, %arg3: memref<2x3x8xi32, #tpu.memory_space<vmem>>, %arg4: memref<2x8x8xf32, #tpu.memory_space<vmem>>) attributes {dimension_semantics = [#tpu.dimension_semantics<parallel>, #tpu.dimension_semantics<arbitrary>], iteration_bounds = array<i64: 1, 1>, scalar_prefetch = 0 : i64, scratch_operands = 1 : i64, tpu.core_type = #tpu.core_type<tc>, window_params = [{transform_indices = @transform_0, window_bounds = array<i64: 2, 8, 256>}, {transform_indices = @transform_1, window_bounds = array<i64: 2, 3, 8>}]} {
    %c0_i32 = arith.constant 0 : i32
    %0 = arith.cmpi eq, %arg1, %c0_i32 : i32
    %1 = arith.extui %0 : i1 to i32
    %c0_i32_0 = arith.constant 0 : i32
    %2 = arith.cmpi ne, %1, %c0_i32_0 : i32
    scf.if %2 {
      %cst_18 = arith.constant 0.000000e+00 : f32
      %32 = vector.broadcast %cst_18 : f32 to vector<2x8x8xf32>
      %c0_19 = arith.constant 0 : index
      %c0_20 = arith.constant 0 : index
      %c0_21 = arith.constant 0 : index
      %33 = vector.load %arg4[%c0_19, %c0_20, %c0_21] : memref<2x8x8xf32, #tpu.memory_space<vmem>>, vector<2x8x8xf32>
      tpu.vector_store %arg4[%c0_19, %c0_20, %c0_21], %32 {strides = array<i32>} : memref<2x8x8xf32, #tpu.memory_space<vmem>>, vector<2x8x8xf32>,
    } else {
    }
    %c0 = arith.constant 0 : index
    %c0_1 = arith.constant 0 : index
    %c0_2 = arith.constant 0 : index
    %3 = vector.load %arg2[%c0, %c0_1, %c0_2] : memref<2x8x256xf32, #tpu.memory_space<vmem>>, vector<2x8x256xf32>
    %cst = arith.constant dense<0.000000e+00> : vector<2x256xf32>
    %4 = vector.multi_reduction <add>, %3, %cst [1] : vector<2x8x256xf32> to vector<2x256xf32>
    %5 = vector.shape_cast %4 : vector<2x256xf32> to vector<2x1x256xf32>
    %6 = arith.mulf %3, %3 : vector<2x8x256xf32>
    %cst_3 = arith.constant dense<0.000000e+00> : vector<2x256xf32>
    %7 = vector.multi_reduction <add>, %6, %cst_3 [1] : vector<2x8x256xf32> to vector<2x256xf32>
    %8 = vector.shape_cast %7 : vector<2x256xf32> to vector<2x1x256xf32>
    %cst_4 = arith.constant 1.250000e-01 : f32
    %9 = vector.broadcast %cst_4 : f32 to vector<2x1x256xf32>
    %10 = arith.mulf %5, %9 : vector<2x1x256xf32>
    %cst_5 = arith.constant 8.000000e+00 : f32
    %11 = vector.broadcast %cst_5 : f32 to vector<2x1x256xf32>
    %12 = arith.mulf %11, %10 : vector<2x1x256xf32>
    %13 = arith.mulf %12, %10 : vector<2x1x256xf32>
    %14 = arith.subf %8, %13 : vector<2x1x256xf32>
    %cst_6 = arith.constant 0.142857149 : f32
    %15 = vector.broadcast %cst_6 : f32 to vector<2x1x256xf32>
    %16 = arith.mulf %14, %15 : vector<2x1x256xf32>
    %cst_7 = arith.constant 0.000000e+00 : f32
    %17 = vector.broadcast %cst_7 : f32 to vector<2x1x256xf32>
    %18 = arith.maximumf %16, %17 : vector<2x1x256xf32>
    %19 = math.sqrt %18 : vector<2x1x256xf32>
    %cst_8 = arith.constant 9.99999974E-6 : f32
    %20 = vector.broadcast %cst_8 : f32 to vector<2x1x256xf32>
    %21 = arith.addf %19, %20 : vector<2x1x256xf32>
    %22 = arith.divf %10, %21 : vector<2x1x256xf32>
    %23 = vector.broadcast %22 : vector<2x1x256xf32> to vector<2x8x256xf32>
    %24 = arith.subf %3, %23 : vector<2x8x256xf32>
    %c0_9 = arith.constant 0 : index
    %c0_10 = arith.constant 0 : index
    %c0_11 = arith.constant 0 : index
    %25 = vector.load %arg4[%c0_9, %c0_10, %c0_11] : memref<2x8x8xf32, #tpu.memory_space<vmem>>, vector<2x8x8xf32>
    %cst_12 = arith.constant dense<0.000000e+00> : vector<2x8x8xf32>
    %26 = tpu.matmul %24, %24, %cst_12 {dimension_numbers = #tpu.dot_dimension_numbers<[2], [2], [1], [1], [0, 0, 0, 1, 1, 1], [0], [0]>} : vector<2x8x256xf32>, vector<2x8x256xf32>, vector<2x8x8xf32> -> vector<2x8x8xf32>
    %27 = arith.addf %25, %26 : vector<2x8x8xf32>
    %c0_13 = arith.constant 0 : index
    %c0_14 = arith.constant 0 : index
    %c0_15 = arith.constant 0 : index
    %28 = vector.load %arg4[%c0_13, %c0_14, %c0_15] : memref<2x8x8xf32, #tpu.memory_space<vmem>>, vector<2x8x8xf32>
    tpu.vector_store %arg4[%c0_13, %c0_14, %c0_15], %27 {strides = array<i32>} : memref<2x8x8xf32, #tpu.memory_space<vmem>>, vector<2x8x8xf32>,
    %c0_i32_16 = arith.constant 0 : i32
    %29 = arith.cmpi eq, %arg1, %c0_i32_16 : i32
    %30 = arith.extui %29 : i1 to i32
    %c0_i32_17 = arith.constant 0 : i32
    %31 = arith.cmpi ne, %30, %c0_i32_17 : i32
    scf.if %31 {
      %c0_18 = arith.constant 0 : index
      %c0_19 = arith.constant 0 : index
      %c0_20 = arith.constant 0 : index
      %32 = vector.load %arg4[%c0_18, %c0_19, %c0_20] : memref<2x8x8xf32, #tpu.memory_space<vmem>>, vector<2x8x8xf32>
      %33 = tpu.iota {dimensions = array<i32: 1>} : vector<2x8x8xi32>
      %34 = tpu.iota {dimensions = array<i32: 1>} : vector<2x8xi32>
      %cst_21 = arith.constant dense<0xFF800000> : vector<2x8xf32>
      %35 = vector.multi_reduction <maximumf>, %32, %cst_21 [1] : vector<2x8x8xf32> to vector<2x8xf32>
      %36 = vector.shape_cast %35 : vector<2x8xf32> to vector<2x1x8xf32>
      %37 = vector.broadcast %36 : vector<2x1x8xf32> to vector<2x8x8xf32>
      %38 = arith.cmpf oeq, %32, %37 : vector<2x8x8xf32>
      %c8_i32 = arith.constant 8 : i32
      %39 = vector.broadcast %c8_i32 : i32 to vector<2x8x8xi32>
      %40 = arith.select %38, %33, %39 : vector<2x8x8xi1>, vector<2x8x8xi32>
      %cst_22 = arith.constant dense<2147483647> : vector<2x8xi32>
      %41 = vector.multi_reduction <minsi>, %40, %cst_22 [1] : vector<2x8x8xi32> to vector<2x8xi32>
      %42 = arith.subi %41, %34 : vector<2x8xi32>
      %43 = vector.shape_cast %42 : vector<2x8xi32> to vector<2x1x8xi32>
      %c0_23 = arith.constant 0 : index
      %c0_24 = arith.constant 0 : index
      %c0_25 = arith.constant 0 : index
      %44 = vector.load %arg3[%c0_23, %c0_24, %c0_25] : memref<2x3x8xi32, #tpu.memory_space<vmem>>, vector<2x1x8xi32>
      tpu.vector_store %arg3[%c0_23, %c0_24, %c0_25], %43 {strides = array<i32>} : memref<2x3x8xi32, #tpu.memory_space<vmem>>, vector<2x1x8xi32>,
      %45 = vector.shape_cast %41 : vector<2x8xi32> to vector<2x1x8xi32>
      %46 = vector.broadcast %45 : vector<2x1x8xi32> to vector<2x8x8xi32>
      %47 = arith.cmpi eq, %33, %46 : vector<2x8x8xi32>
      %cst_26 = arith.constant -3.40282347E+38 : f32
      %48 = vector.broadcast %cst_26 : f32 to vector<2x8x8xf32>
      %49 = arith.select %47, %48, %32 : vector<2x8x8xi1>, vector<2x8x8xf32>
      %cst_27 = arith.constant dense<0xFF800000> : vector<2x8xf32>
      %50 = vector.multi_reduction <maximumf>, %49, %cst_27 [1] : vector<2x8x8xf32> to vector<2x8xf32>
      %51 = vector.shape_cast %50 : vector<2x8xf32> to vector<2x1x8xf32>
      %52 = vector.broadcast %51 : vector<2x1x8xf32> to vector<2x8x8xf32>
      %53 = arith.cmpf oeq, %49, %52 : vector<2x8x8xf32>
      %c8_i32_28 = arith.constant 8 : i32
      %54 = vector.broadcast %c8_i32_28 : i32 to vector<2x8x8xi32>
      %55 = arith.select %53, %33, %54 : vector<2x8x8xi1>, vector<2x8x8xi32>
      %cst_29 = arith.constant dense<2147483647> : vector<2x8xi32>
      %56 = vector.multi_reduction <minsi>, %55, %cst_29 [1] : vector<2x8x8xi32> to vector<2x8xi32>
      %57 = arith.subi %56, %34 : vector<2x8xi32>
      %58 = vector.shape_cast %57 : vector<2x8xi32> to vector<2x1x8xi32>
      %c0_30 = arith.constant 0 : index
      %c1 = arith.constant 1 : index
      %c0_31 = arith.constant 0 : index
      %59 = vector.load %arg3[%c0_30, %c1, %c0_31] : memref<2x3x8xi32, #tpu.memory_space<vmem>>, vector<2x1x8xi32>
      tpu.vector_store %arg3[%c0_30, %c1, %c0_31], %58 {strides = array<i32>} : memref<2x3x8xi32, #tpu.memory_space<vmem>>, vector<2x1x8xi32>,
      %60 = vector.shape_cast %56 : vector<2x8xi32> to vector<2x1x8xi32>
      %61 = vector.broadcast %60 : vector<2x1x8xi32> to vector<2x8x8xi32>
      %62 = arith.cmpi eq, %33, %61 : vector<2x8x8xi32>
      %cst_32 = arith.constant -3.40282347E+38 : f32
      %63 = vector.broadcast %cst_32 : f32 to vector<2x8x8xf32>
      %64 = arith.select %62, %63, %49 : vector<2x8x8xi1>, vector<2x8x8xf32>
      %cst_33 = arith.constant dense<0xFF800000> : vector<2x8xf32>
      %65 = vector.multi_reduction <maximumf>, %64, %cst_33 [1] : vector<2x8x8xf32> to vector<2x8xf32>
      %66 = vector.shape_cast %65 : vector<2x8xf32> to vector<2x1x8xf32>
      %67 = vector.broadcast %66 : vector<2x1x8xf32> to vector<2x8x8xf32>
      %68 = arith.cmpf oeq, %64, %67 : vector<2x8x8xf32>
      %c8_i32_34 = arith.constant 8 : i32
      %69 = vector.broadcast %c8_i32_34 : i32 to vector<2x8x8xi32>
      %70 = arith.select %68, %33, %69 : vector<2x8x8xi1>, vector<2x8x8xi32>
      %cst_35 = arith.constant dense<2147483647> : vector<2x8xi32>
      %71 = vector.multi_reduction <minsi>, %70, %cst_35 [1] : vector<2x8x8xi32> to vector<2x8xi32>
      %72 = arith.subi %71, %34 : vector<2x8xi32>
      %73 = vector.shape_cast %72 : vector<2x8xi32> to vector<2x1x8xi32>
      %c0_36 = arith.constant 0 : index
      %c2 = arith.constant 2 : index
      %c0_37 = arith.constant 0 : index
      %74 = vector.load %arg3[%c0_36, %c2, %c0_37] : memref<2x3x8xi32, #tpu.memory_space<vmem>>, vector<2x1x8xi32>
      tpu.vector_store %arg3[%c0_36, %c2, %c0_37], %73 {strides = array<i32>} : memref<2x3x8xi32, #tpu.memory_space<vmem>>, vector<2x1x8xi32>,
    } else {
    }
    return
  }
  func.func @transform_0(%arg0: i32, %arg1: i32) -> (i32, i32, i32) {
    %c0_i32 = arith.constant 0 : i32
    %c0_i32_0 = arith.constant 0 : i32
    return %arg0, %c0_i32, %arg1 : i32, i32, i32
  }
  func.func @transform_1(%arg0: i32, %arg1: i32) -> (i32, i32, i32) {
    %c0_i32 = arith.constant 0 : i32
    %c0_i32_0 = arith.constant 0 : i32
    %c0_i32_1 = arith.constant 0 : i32
    return %arg0, %c0_i32, %c0_i32_0 : i32, i32, i32
  }
}

</mosaic_0001>

<bundles_post_ra>
// kernel: tpu_custom_call.1
= control target key start
LH: loop header
LB: loop body
LE: loop exit
PB: predicated region body
PF: predicated region fallthrough
CT: control target
= control target key end

     0   :  { %6 = vsyncpa [#allocation4], 0  ;;  %s491_s6 = smov [#allocation3]   ;;  %s618_s0 = inlined_call_operand.hbm [shape: f32[2,8,256], index: 0, kind: input, shape index: {}]   ;;  %s619_s1 = inlined_call_operand.vmem [shape: s32[2,3,8], index: 1, kind: output, shape index: {}]  }
   0x1   :  { %s12_s7 = sshll.u32 %s491_s6, 4  ;;  %s13_s7 = int_to_ptr.vmem [resolvable:$true] %s12_s7 }
   0x2   :  { %s477_s8 = scalar_lea.vmem %s13_s7, 512  ;;  %p482_p1 = scmp.lt.s32.totalorder %s13_s7, %s13_s7 }
   0x3   :  { %p478_p0 = scmp.ne.s32.totalorder %s13_s7, %s477_s8  ;;  %p483_p2 = scmp.lt.s32.totalorder %s477_s8, %s477_s8 }
   0x5   :  { %p484_p3 = por %p483_p2, %p482_p1 }
   0x7   :  { %p485_p4 = pnand %p484_p3, %p478_p0 }
   0x9   :  { %488 = shalt.err (!%p485_p4)
}
   0xa   :  { %s492_s9 = smov 256   ;;  %s493_s10 = smov 16  }
   0xb   :  { %18 = dma.hbm_to_vmem [thread:$0]  %s618_s0, 512, %s13_s7, [#allocation4], %s492_s9, %s492_s9, %s493_s10  }
   0xc   :  { %489 = dma.done.wait [#allocation4], 512  }
   0xd   :  { %490 = vsyncadd [#allocation4], 4294966784  ;;  %vm26_vm0 = vcmask 64512   ;;  %v494_v0 = vmov 0.0   ;;  %v510_v1 = vld [vmem:[#allocation3 + $0x8] sm:$0xff]  ;;  %v512_v2 = vld [vmem:[#allocation3 + $0x18] sm:$0xff] }
   0xe   :  { %27 = vst.msk [vmem:[#allocation2] sm:$0xff] %vm26_vm0, %v494_v0  ;;  %28 = vst.msk [vmem:[#allocation2 + $0x8] sm:$0xff] %vm26_vm0, %v494_v0  ;;  %v514_v3 = vld [vmem:[#allocation3] sm:$0xff]  ;;  %v39_v4 = vrot.slane %v510_v1, 4  ;;  %v58_v5 = vmul.f32 %v510_v1, %v510_v1  ;;  %v51_v6 = vrot.slane %v512_v2, 4  ;;  %v60_v7 = vmul.f32 %v512_v2, %v512_v2  ;;  %v522_v8 = vld [vmem:[#allocation3 + $0x10] sm:$0xff] }
   0xf   :  { %v33_v9 = vrot.slane %v514_v3, 4  ;;  %v57_v10 = vmul.f32 %v514_v3, %v514_v3  ;;  %v45_v11 = vrot.slane %v522_v8, 4  ;;  %v59_v12 = vmul.f32 %v522_v8, %v522_v8 }
  0x10   :  { %v40_v13 = vadd.f32 %v39_v4, %v510_v1  ;;  %v67_v14 = vrot.slane %v58_v5, 4  ;;  %v52_v15 = vadd.f32 %v51_v6, %v512_v2  ;;  %v79_v16 = vrot.slane %v60_v7, 4 }
  0x11   :  { %v34_v17 = vadd.f32 %v33_v9, %v514_v3  ;;  %v61_v18 = vrot.slane %v57_v10, 4  ;;  %v46_v19 = vadd.f32 %v45_v11, %v522_v8  ;;  %v73_v20 = vrot.slane %v59_v12, 4 }
  0x12   :  { %v41_v21 = vrot.slane %v40_v13, 2  ;;  %v68_v22 = vadd.f32 %v67_v14, %v58_v5  ;;  %v53_v23 = vrot.slane %v52_v15, 2  ;;  %v80_v24 = vadd.f32 %v79_v16, %v60_v7 }
  0x13   :  { %v35_v25 = vrot.slane %v34_v17, 2  ;;  %v62_v26 = vadd.f32 %v61_v18, %v57_v10  ;;  %v47_v27 = vrot.slane %v46_v19, 2  ;;  %v74_v28 = vadd.f32 %v73_v20, %v59_v12 }
  0x14   :  { %v42_v29 = vadd.f32 %v41_v21, %v40_v13  ;;  %v69_v30 = vrot.slane %v68_v22, 2  ;;  %v54_v31 = vadd.f32 %v53_v23, %v52_v15  ;;  %v81_v32 = vrot.slane %v80_v24, 2 }
  0x15   :  { %v36_v33 = vadd.f32 %v35_v25, %v34_v17  ;;  %v63_v34 = vrot.slane %v62_v26, 2  ;;  %v48_v35 = vadd.f32 %v47_v27, %v46_v19  ;;  %v75_v36 = vrot.slane %v74_v28, 2 }
  0x16   :  { %v43_v37 = vrot.slane %v42_v29, 1  ;;  %v70_v38 = vadd.f32 %v69_v30, %v68_v22  ;;  %v55_v39 = vrot.slane %v54_v31, 1  ;;  %v82_v40 = vadd.f32 %v81_v32, %v80_v24 }
  0x17   :  { %v37_v41 = vrot.slane %v36_v33, 1  ;;  %v64_v42 = vadd.f32 %v63_v34, %v62_v26  ;;  %v49_v43 = vrot.slane %v48_v35, 1  ;;  %v76_v44 = vadd.f32 %v75_v36, %v74_v28 }
  0x18   :  { %v44_v45 = vadd.f32 %v43_v37, %v42_v29  ;;  %v71_v46 = vrot.slane %v70_v38, 1  ;;  %v56_v47 = vadd.f32 %v55_v39, %v54_v31  ;;  %v83_v48 = vrot.slane %v82_v40, 1 }
  0x19   :  { %v38_v49 = vadd.f32 %v37_v41, %v36_v33  ;;  %v65_v50 = vrot.slane %v64_v42, 1  ;;  %v50_v51 = vadd.f32 %v49_v43, %v48_v35  ;;  %v77_v52 = vrot.slane %v76_v44, 1 }
  0x1a   :  { %v534_v53 = vmul.f32 0.125, %v44_v45  ;;  %v536_v54 = vmul.f32 0.125, %v56_v47  ;;  %v72_v57 = vadd.f32 %v71_v46, %v70_v38  ;;  %v84_v59 = vadd.f32 %v83_v48, %v82_v40 }
  0x1b   :  { %v538_v55 = vmul.f32 0.125, %v38_v49  ;;  %v540_v56 = vmul.f32 0.125, %v50_v51  ;;  %v66_v61 = vadd.f32 %v65_v50, %v64_v42  ;;  %v78_v63 = vadd.f32 %v77_v52, %v76_v44 }
  0x1c   :  { %v90_v58 = vmul.f32 8.0, %v534_v53  ;;  %v92_v60 = vmul.f32 8.0, %v536_v54 }
  0x1d   :  { %v89_v62 = vmul.f32 8.0, %v538_v55  ;;  %v91_v0 = vmul.f32 8.0, %v540_v56 }
  0x1e   :  { %v94_v4 = vmul.f32 %v90_v58, %v534_v53  ;;  %v96_v5 = vmul.f32 %v92_v60, %v536_v54 }
  0x1f   :  { %v93_v6 = vmul.f32 %v89_v62, %v538_v55  ;;  %v95_v7 = vmul.f32 %v91_v0, %v540_v56 }
  0x20   :  { %v98_v9 = vsub.f32 %v72_v57, %v94_v4  ;;  %v100_v10 = vsub.f32 %v84_v59, %v96_v5 }
  0x21   :  { %v97_v11 = vsub.f32 %v66_v61, %v93_v6  ;;  %v99_v12 = vsub.f32 %v78_v63, %v95_v7 }
  0x22   :  { %v102_v13 = vmul.f32 0.14285715, %v98_v9  ;;  %v104_v14 = vmul.f32 0.14285715, %v100_v10  ;;  %v305_v10 = vlaneseq }
  0x23   :  { %v101_v15 = vmul.f32 0.14285715, %v97_v11  ;;  %v103_v16 = vmul.f32 0.14285715, %v99_v12 }
  0x24   :  { %v106_v17 = vmax.f32 %v102_v13, 0.0  ;;  %v108_v18 = vmax.f32 %v104_v14, 0.0 }
  0x25   :  { %v105_v19 = vmax.f32 %v101_v15, 0.0  ;;  %v107_v20 = vmax.f32 %v103_v16, 0.0  ;;  %v564_v15 = vshrl.u32 %v305_v10, 7 }
  0x26   :  { %453 = vrsqrt.f32 %v106_v17  ;;  %vm118_vm1 = vcmp.eq.f32.partialorder %v106_v17, inf  ;;  %vm120_vm2 = vcmp.eq.f32.partialorder %v106_v17, 0.0  ;;  %v121_v22 = vand.u32 2147483648, %v106_v17 }
  0x27   :  { %455 = vrsqrt.f32 %v108_v18  ;;  %vm132_vm3 = vcmp.eq.f32.partialorder %v108_v18, inf  ;;  %vm134_vm4 = vcmp.eq.f32.partialorder %v108_v18, 0.0  ;;  %v135_v25 = vand.u32 2147483648, %v108_v18 }
  0x28   :  { %457 = vrsqrt.f32 %v105_v19  ;;  %vm111_vm5 = vcmp.eq.f32.partialorder %v105_v19, inf  ;;  %vm113_vm6 = vcmp.eq.f32.partialorder %v105_v19, 0.0  ;;  %v114_v28 = vand.u32 2147483648, %v105_v19 }
  0x29   :  { %459 = vrsqrt.f32 %v107_v20  ;;  %vm125_vm7 = vcmp.eq.f32.partialorder %v107_v20, inf  ;;  %v128_v32 = vand.u32 2147483648, %v107_v20  ;;  %vm127_vm8 = vcmp.eq.f32.partialorder %v107_v20, 0.0 }
  0x33   :  { %v454_v21 = vpop.eup %453 }
  0x34   :  { %v456_v23 = vpop.eup %455  ;;  %v117_v24 = vmul.f32 %v454_v21, %v106_v17 }
  0x35   :  { %v458_v26 = vpop.eup %457  ;;  %v131_v27 = vmul.f32 %v456_v23, %v108_v18 }
  0x36   :  { %v460_v29 = vpop.eup %459  ;;  %v119_v30 = vsel %vm118_vm1, %v106_v17, %v117_v24  ;;  %v110_v31 = vmul.f32 %v458_v26, %v105_v19  ;;  %vm349_vm1 = vcmask 57344  }
  0x37   :  { %v122_v33 = vsel %vm120_vm2, %v121_v22, %v119_v30  ;;  %v133_v34 = vsel %vm132_vm3, %v108_v18, %v131_v27  ;;  %v124_v35 = vmul.f32 %v460_v29, %v107_v20  ;;  %v570_v30 = vand.u32 127, %v305_v10 }
  0x38   :  { %v138_v36 = vadd.f32 1e-05, %v122_v33  ;;  %v136_v37 = vsel %vm134_vm4, %v135_v25, %v133_v34  ;;  %v112_v38 = vsel %vm111_vm5, %v105_v19, %v110_v31 }
  0x39   :  { %v140_v39 = vadd.f32 1e-05, %v136_v37  ;;  %v115_v40 = vsel %vm113_vm6, %v114_v28, %v112_v38  ;;  %v126_v41 = vsel %vm125_vm7, %v107_v20, %v124_v35 }
  0x3a   :  { %461 = vrcp.f32 %v138_v36  ;;  %v137_v42 = vadd.f32 1e-05, %v115_v40  ;;  %v129_v43 = vsel %vm127_vm8, %v128_v32, %v126_v41 }
  0x3b   :  { %463 = vrcp.f32 %v140_v39  ;;  %v139_v44 = vadd.f32 1e-05, %v129_v43 }
  0x3c   :  { %465 = vrcp.f32 %v137_v42 }
  0x3d   :  { %467 = vrcp.f32 %v139_v44 }
  0x47   :  { %v462_v45 = vpop.eup %461 }
  0x48   :  { %v464_v46 = vpop.eup %463  ;;  %v144_v47 = vmul.f32 %v462_v45, %v534_v53  ;;  %v153_v53 = vld [vmem:[#allocation2] sm:$0xff] }
  0x49   :  { %v466_v48 = vpop.eup %465  ;;  %v148_v49 = vmul.f32 %v464_v46, %v536_v54 }
  0x4a   :  { %v468_v50 = vpop.eup %467  ;;  %v150_v51 = vsub.f32 %v510_v1, %v144_v47  ;;  %v142_v52 = vmul.f32 %v466_v48, %v538_v55  ;;  %v154_v1 = vld [vmem:[#allocation2 + $0x8] sm:$0xff] }
  0x4b   :  { %v152_v57 = vsub.f32 %v512_v2, %v148_v49  ;;  %v146_v58 = vmul.f32 %v468_v50, %v540_v56 }
  0x4c   :  { %185 = vmatprep.subr.mxu0 %v150_v51  ;;  %v149_v59 = vsub.f32 %v514_v3, %v142_v52  ;;  %219 = vmatprep.mubr.f32.mxu0 %v150_v51 }
  0x4d   :  { %255 = vmatprep.subr.mxu1 %v152_v57  ;;  %v151_v60 = vsub.f32 %v522_v8, %v146_v58  ;;  %289 = vmatprep.mubr.f32.mxu1 %v152_v57 }
  0x4e   :  { %186 = vmatpush1.xpose.msra.mxu0 %v149_v59 }
  0x4f   :  { %256 = vmatpush1.xpose.msra.mxu1 %v151_v60 }
  0x51   :  { %220 = vmatmul.mubr.f32.vlgmr.msra.gmra.mxu0 %v149_v59 }
  0x52   :  { %290 = vmatmul.mubr.f32.vlgmr.msra.gmra.mxu1 %v151_v60 }
 0x111   :  { %v221_v54 = vpop.f32.mrf.mxu0 }
 0x112   :  { %v295_v55 = vadd.f32 %v221_v54, %v153_v53  ;;  %v291_v61 = vpop.f32.mrf.mxu1 }
 0x113   :  { %v296_v2 = vadd.f32 %v291_v61, %v154_v1  ;;  %v223_v62 = vpop.f32.mrf.mxu0 }
 0x114   :  { %298 = vst.msk [vmem:[#allocation2] sm:$0xff] %vm26_vm0, %v295_v55  ;;  %v293_v56 = vpop.f32.mrf.mxu1 }
 0x115   :  { %299 = vst.msk [vmem:[#allocation2 + $0x8] sm:$0xff] %vm26_vm0, %v296_v2 }
 0x11b   :  { %v303_v3 = vld [vmem:[#allocation2] sm:$0xff] }
 0x11c   :  { %v309_v8 = vsel %vm26_vm0, %v303_v3, -inf  ;;  %v304_v63 = vld [vmem:[#allocation2 + $0x8] sm:$0xff] }
 0x11d   :  { %v310_v0 = vrot.slane %v309_v8, 4  ;;  %v316_v4 = vsel %vm26_vm0, %v304_v63, -inf }
 0x11e   :  { %v317_v5 = vrot.slane %v316_v4, 4 }
 0x11f   :  { %v311_v6 = vmax.f32 %v309_v8, %v310_v0 }
 0x120   :  { %v318_v7 = vmax.f32 %v316_v4, %v317_v5 }
 0x121   :  { %v312_v9 = vrot.slane %v311_v6, 2 }
 0x122   :  { %v319_v11 = vrot.slane %v318_v7, 2 }
 0x123   :  { %v313_v12 = vmax.f32 %v311_v6, %v312_v9 }
 0x124   :  { %v320_v13 = vmax.f32 %v318_v7, %v319_v11 }
 0x125   :  { %v314_v14 = vrot.slane %v313_v12, 1 }
 0x126   :  { %v321_v16 = vrot.slane %v320_v13, 1 }
 0x127   :  { %v315_v17 = vmax.f32 %v313_v12, %v314_v14 }
 0x128   :  { %v322_v18 = vmax.f32 %v320_v13, %v321_v16 }
 0x129   :  { %vm323_vm9 = vcmp.eq.f32.partialorder %v303_v3, %v315_v17 }
 0x12a   :  { %v325_v19 = vsel %vm323_vm9, %v564_v15, 8  ;;  %vm324_vm10 = vcmp.eq.f32.partialorder %v304_v63, %v322_v18 }
 0x12b   :  { %v327_v20 = vsel %vm26_vm0, %v325_v19, 2147483647  ;;  %v326_v21 = vsel %vm324_vm10, %v564_v15, 8 }
 0x12c   :  { %v328_v22 = vrot.slane %v327_v20, 4  ;;  %v337_v23 = vsel %vm26_vm0, %v326_v21, 2147483647 }
 0x12d   :  { %v338_v24 = vrot.slane %v337_v23, 4 }
 0x12e   :  { %vm329_vm11 = vcmp.lt.s32.totalorder %v327_v20, %v328_v22 }
 0x12f   :  { %v330_v25 = vsel %vm329_vm11, %v327_v20, %v328_v22  ;;  %vm339_vm12 = vcmp.lt.s32.totalorder %v337_v23, %v338_v24 }
 0x130   :  { %v331_v26 = vrot.slane %v330_v25, 2  ;;  %v340_v27 = vsel %vm339_vm12, %v337_v23, %v338_v24 }
 0x131   :  { %v341_v28 = vrot.slane %v340_v27, 2 }
 0x132   :  { %vm332_vm13 = vcmp.lt.s32.totalorder %v330_v25, %v331_v26 }
 0x133   :  { %v333_v29 = vsel %vm332_vm13, %v330_v25, %v331_v26  ;;  %vm342_vm14 = vcmp.lt.s32.totalorder %v340_v27, %v341_v28 }
 0x134   :  { %v334_v31 = vrot.slane %v333_v29, 1  ;;  %v343_v32 = vsel %vm342_vm14, %v340_v27, %v341_v28 }
 0x135   :  { %v344_v33 = vrot.slane %v343_v32, 1 }
 0x136   :  { %vm335_vm15 = vcmp.lt.s32.totalorder %v333_v29, %v334_v31 }
 0x137   :  { %v336_v34 = vsel %vm335_vm15, %v333_v29, %v334_v31  ;;  %vm345_vm2 = vcmp.lt.s32.totalorder %v343_v32, %v344_v33 }
 0x138   :  { %v347_v35 = vsub.s32 %v336_v34, %v570_v30  ;;  %vm352_vm3 = vcmp.eq.s32.totalorder %v564_v15, %v336_v34  ;;  %v346_v36 = vsel %vm345_vm2, %v343_v32, %v344_v33 }
 0x139   :  { %v354_v37 = vsel %vm352_vm3, -3.4028235e+38, %v303_v3  ;;  %v348_v38 = vsub.s32 %v346_v36, %v570_v30  ;;  %vm353_vm4 = vcmp.eq.s32.totalorder %v564_v15, %v346_v36 }
 0x13a   :  { %350 = vst.msk [vmem:[%s619_s1] sm:$0x1] %vm349_vm1, %v347_v35  ;;  %v356_v39 = vsel %vm26_vm0, %v354_v37, -inf  ;;  %v355_v40 = vsel %vm353_vm4, -3.4028235e+38, %v304_v63 }
 0x13b   :  { %v357_v41 = vrot.slane %v356_v39, 4  ;;  %351 = vst.msk [vmem:[%s619_s1 + $0x4] sm:$0x1] %vm349_vm1, %v348_v38  ;;  %v363_v42 = vsel %vm26_vm0, %v355_v40, -inf }
 0x13c   :  { %v364_v43 = vrot.slane %v363_v42, 4 }
 0x13d   :  { %v358_v44 = vmax.f32 %v356_v39, %v357_v41 }
 0x13e   :  { %v365_v45 = vmax.f32 %v363_v42, %v364_v43 }
 0x13f   :  { %v359_v46 = vrot.slane %v358_v44, 2 }
 0x140   :  { %v366_v47 = vrot.slane %v365_v45, 2 }
 0x141   :  { %v360_v48 = vmax.f32 %v358_v44, %v359_v46 }
 0x142   :  { %v367_v49 = vmax.f32 %v365_v45, %v366_v47 }
 0x143   :  { %v361_v50 = vrot.slane %v360_v48, 1 }
 0x144   :  { %v368_v51 = vrot.slane %v367_v49, 1 }
 0x145   :  { %v362_v52 = vmax.f32 %v360_v48, %v361_v50 }
 0x146   :  { %v369_v57 = vmax.f32 %v367_v49, %v368_v51 }
 0x147   :  { %vm370_vm5 = vcmp.eq.f32.partialorder %v354_v37, %v362_v52 }
 0x148   :  { %v372_v58 = vsel %vm370_vm5, %v564_v15, 8  ;;  %vm371_vm6 = vcmp.eq.f32.partialorder %v355_v40, %v369_v57 }
 0x149   :  { %v374_v59 = vsel %vm26_vm0, %v372_v58, 2147483647  ;;  %v373_v60 = vsel %vm371_vm6, %v564_v15, 8 }
 0x14a   :  { %v375_v53 = vrot.slane %v374_v59, 4  ;;  %v384_v1 = vsel %vm26_vm0, %v373_v60, 2147483647 }
 0x14b   :  { %v385_v54 = vrot.slane %v384_v1, 4 }
 0x14c   :  { %vm376_vm7 = vcmp.lt.s32.totalorder %v374_v59, %v375_v53 }
 0x14d   :  { %v377_v55 = vsel %vm376_vm7, %v374_v59, %v375_v53  ;;  %vm386_vm8 = vcmp.lt.s32.totalorder %v384_v1, %v385_v54 }
 0x14e   :  { %v378_v61 = vrot.slane %v377_v55, 2  ;;  %v387_v2 = vsel %vm386_vm8, %v384_v1, %v385_v54 }
 0x14f   :  { %v388_v62 = vrot.slane %v387_v2, 2 }
 0x150   :  { %vm379_vm9 = vcmp.lt.s32.totalorder %v377_v55, %v378_v61 }
 0x151   :  { %v380_v56 = vsel %vm379_vm9, %v377_v55, %v378_v61  ;;  %vm389_vm10 = vcmp.lt.s32.totalorder %v387_v2, %v388_v62 }
 0x152   :  { %v381_v3 = vrot.slane %v380_v56, 1  ;;  %v390_v8 = vsel %vm389_vm10, %v387_v2, %v388_v62 }
 0x153   :  { %v391_v63 = vrot.slane %v390_v8, 1 }
 0x154   :  { %vm382_vm11 = vcmp.lt.s32.totalorder %v380_v56, %v381_v3 }
 0x155   :  { %v383_v0 = vsel %vm382_vm11, %v380_v56, %v381_v3  ;;  %vm392_vm12 = vcmp.lt.s32.totalorder %v390_v8, %v391_v63 }
 0x156   :  { %v394_v4 = vsub.s32 %v383_v0, %v570_v30  ;;  %vm398_vm13 = vcmp.eq.s32.totalorder %v564_v15, %v383_v0  ;;  %v393_v5 = vsel %vm392_vm12, %v390_v8, %v391_v63 }
 0x157   :  { %v400_v6 = vsel %vm398_vm13, -3.4028235e+38, %v354_v37  ;;  %v395_v7 = vsub.s32 %v393_v5, %v570_v30  ;;  %vm399_vm14 = vcmp.eq.s32.totalorder %v564_v15, %v393_v5 }
 0x158   :  { %396 = vst.msk [vmem:[%s619_s1 + $0x1] sm:$0x1] %vm349_vm1, %v394_v4  ;;  %v402_v9 = vsel %vm26_vm0, %v400_v6, -inf  ;;  %v401_v10 = vsel %vm399_vm14, -3.4028235e+38, %v355_v40 }
 0x159   :  { %v403_v11 = vrot.slane %v402_v9, 4  ;;  %397 = vst.msk [vmem:[%s619_s1 + $0x5] sm:$0x1] %vm349_vm1, %v395_v7  ;;  %v409_v12 = vsel %vm26_vm0, %v401_v10, -inf }
 0x15a   :  { %v410_v13 = vrot.slane %v409_v12, 4 }
 0x15b   :  { %v404_v14 = vmax.f32 %v402_v9, %v403_v11 }
 0x15c   :  { %v411_v16 = vmax.f32 %v409_v12, %v410_v13 }
 0x15d   :  { %v405_v17 = vrot.slane %v404_v14, 2 }
 0x15e   :  { %v412_v18 = vrot.slane %v411_v16, 2 }
 0x15f   :  { %v406_v19 = vmax.f32 %v404_v14, %v405_v17 }
 0x160   :  { %v413_v20 = vmax.f32 %v411_v16, %v412_v18 }
 0x161   :  { %v407_v21 = vrot.slane %v406_v19, 1 }
 0x162   :  { %v414_v22 = vrot.slane %v413_v20, 1 }
 0x163   :  { %v408_v23 = vmax.f32 %v406_v19, %v407_v21 }
 0x164   :  { %v415_v24 = vmax.f32 %v413_v20, %v414_v22 }
 0x165   :  { %vm416_vm15 = vcmp.eq.f32.partialorder %v400_v6, %v408_v23 }
 0x166   :  { %v418_v25 = vsel %vm416_vm15, %v564_v15, 8  ;;  %vm417_vm2 = vcmp.eq.f32.partialorder %v401_v10, %v415_v24 }
 0x167   :  { %v420_v26 = vsel %vm26_vm0, %v418_v25, 2147483647  ;;  %v419_v27 = vsel %vm417_vm2, %v564_v15, 8 }
 0x168   :  { %v421_v28 = vrot.slane %v420_v26, 4  ;;  %v430_v29 = vsel %vm26_vm0, %v419_v27, 2147483647 }
 0x169   :  { %v431_v31 = vrot.slane %v430_v29, 4 }
 0x16a   :  { %vm422_vm3 = vcmp.lt.s32.totalorder %v420_v26, %v421_v28 }
 0x16b   :  { %v423_v32 = vsel %vm422_vm3, %v420_v26, %v421_v28  ;;  %vm432_vm4 = vcmp.lt.s32.totalorder %v430_v29, %v431_v31 }
 0x16c   :  { %v424_v33 = vrot.slane %v423_v32, 2  ;;  %v433_v34 = vsel %vm432_vm4, %v430_v29, %v431_v31 }
 0x16d   :  { %v434_v35 = vrot.slane %v433_v34, 2 }
 0x16e   :  { %vm425_vm5 = vcmp.lt.s32.totalorder %v423_v32, %v424_v33 }
 0x16f   :  { %v426_v36 = vsel %vm425_vm5, %v423_v32, %v424_v33  ;;  %vm435_vm6 = vcmp.lt.s32.totalorder %v433_v34, %v434_v35 }
 0x170   :  { %v427_v37 = vrot.slane %v426_v36, 1  ;;  %v436_v38 = vsel %vm435_vm6, %v433_v34, %v434_v35 }
 0x171   :  { %v437_v39 = vrot.slane %v436_v38, 1 }
 0x172   :  { %vm428_vm7 = vcmp.lt.s32.totalorder %v426_v36, %v427_v37 }
 0x173   :  { %v429_v40 = vsel %vm428_vm7, %v426_v36, %v427_v37  ;;  %vm438_vm8 = vcmp.lt.s32.totalorder %v436_v38, %v437_v39 }
 0x174   :  { %v440_v15 = vsub.s32 %v429_v40, %v570_v30  ;;  %v439_v41 = vsel %vm438_vm8, %v436_v38, %v437_v39 }
 0x175   :  { %v441_v42 = vsub.s32 %v439_v41, %v570_v30 }
 0x176   :  { %442 = vst.msk [vmem:[%s619_s1 + $0x2] sm:$0x1] %vm349_vm1, %v440_v15 }
 0x177   :  { %443 = vst.msk [vmem:[%s619_s1 + $0x6] sm:$0x1] %vm349_vm1, %v441_v42 }
 0x178   :  { %448 = vsyncpa [#allocation4], 1 }

</bundles_post_ra>
